<compile_context>
chip_gen: v5e
topology: v5e:2x2
jax: 0.10.0
libtpu: 0.0.40
codegen_flags: <defaults>
</compile_context>

<pallas_src>
import jax
import jax.numpy as jnp
from jax.experimental import pallas as pl
from jax.experimental.pallas import tpu as pltpu

B = 2            # batch
IN = 64          # flattened input features fed to PatchNN
OUT = 10         # rows of c  -> patch-layer output width
HIDDEN = 32      # hidden width of the synthetic gate net g
W = OUT + HIDDEN # fused matmul output width
PROWS = IN + 8   # packed-parameter rows (extra block is sublane-aligned)


def patchnn_kernel(x_ref, p_ref, scal_ref, out_ref):
    """Fused PatchNN forward.

    x_ref    : (B, IN)       VMEM
    p_ref    : (IN+8, W)     VMEM   rows 0..IN-1 : [ c.T | g_w1 ]
                                    row  IN      : [ d   | g_b1 ]
                                    row  IN+1    : [ 0   | g_w2 ]   (masked gate head)
                                    rows IN+2..  : zero padding
    scal_ref : (2,)          SMEM   [ K, g_b2 ]
    out_ref  : (B, OUT)      VMEM
    """
    K = scal_ref[0]
    b2 = scal_ref[1]

    # Single MXU matmul covers both the patch layer and g's first (hidden) layer.
    z = jnp.dot(x_ref[...], p_ref[0:IN, :],
                preferred_element_type=jnp.float32)                 # (B, W)
    z = z + p_ref[IN:IN + 1, :]                                     # + [ d | g_b1 ]

    # Gate head (HIDDEN -> 1): ReLU over the full width (the masked w2 row zeroes
    # out the patch-layer lanes), VPU multiply + lane reduction. No unaligned slice.
    gz = jnp.sum(jnp.maximum(z, 0.0) * p_ref[IN + 1:IN + 2, :],
                 axis=-1, keepdims=True) + b2                       # (B, 1)
    gate = 1.0 / (1.0 + jnp.exp(-gz))                               # sigmoid (EUP exp)

    t = K * (gate - 1.0)                                            # K*g(x) - K, (B, 1)
    h = z[:, :OUT]                                                  # layer(x); lane-0-aligned slice
    # ReLU(h + t) - ReLU(-h + t)
    out_ref[...] = jnp.maximum(h + t, 0.0) - jnp.maximum(t - h, 0.0)


def patchnn_forward(x, params):
    c, d = params["c"], params["d"]
    g_w1, g_b1 = params["g_w1"], params["g_b1"]
    g_w2, g_b2 = params["g_w2"], params["g_b2"]

    # __init__-time constant K (exact PyTorch formula).
    K = jnp.maximum(jnp.max(jnp.maximum(c, 0.0).sum(1) + d),
                    jnp.max(jnp.maximum(-c, 0.0).sum(1) - d))

    # Layout-only parameter packing (done once at module-build time in real use).
    wcat = jnp.concatenate([c.T, g_w1], axis=1)                          # (IN, W)
    bias_row = jnp.concatenate([d, g_b1])[None, :]                       # (1, W)
    w2_row = jnp.concatenate([jnp.zeros((OUT,), jnp.float32),
                              g_w2.reshape(-1)])[None, :]                # (1, W)
    pad = jnp.zeros((PROWS - IN - 2, W), jnp.float32)
    p = jnp.concatenate([wcat, bias_row, w2_row, pad], axis=0)           # (IN+8, W)
    scal = jnp.stack([K, g_b2]).astype(jnp.float32)                      # (2,) [K, g_b2]

    vmem = pl.BlockSpec(memory_space=pltpu.MemorySpace.VMEM)
    smem = pl.BlockSpec(memory_space=pltpu.MemorySpace.SMEM)
    return pl.pallas_call(
        patchnn_kernel,
        out_shape=jax.ShapeDtypeStruct((B, OUT), jnp.float32),
        in_specs=[vmem, vmem, smem],
        out_specs=vmem,
    )(x, p, scal)


def make_params(key):
    ks = jax.random.split(key, 6)
    s = 0.1
    return {
        "c":    s * jax.random.normal(ks[0], (OUT, IN), jnp.float32),    # (out, in)
        "d":    s * jax.random.normal(ks[1], (OUT,), jnp.float32),
        "g_w1": s * jax.random.normal(ks[2], (IN, HIDDEN), jnp.float32),
        "g_b1": s * jax.random.normal(ks[3], (HIDDEN,), jnp.float32),
        "g_w2": s * jax.random.normal(ks[4], (HIDDEN, 1), jnp.float32),
        "g_b2": s * jax.random.normal(ks[5], (), jnp.float32),
    }


def reference_forward(x, p):
    # Pure-JAX reference of the same synthetic PatchNN, for a sanity check.
    c, d = p["c"], p["d"]
    K = jnp.maximum(jnp.max(jnp.maximum(c, 0.0).sum(1) + d),
                    jnp.max(jnp.maximum(-c, 0.0).sum(1) - d))
    h = x @ c.T + d                                                  # layer(x)
    hg = jnp.maximum(x @ p["g_w1"] + p["g_b1"], 0.0)
    gz = hg @ p["g_w2"] + p["g_b2"]                                  # (B, 1)
    gate = 1.0 / (1.0 + jnp.exp(-gz))                                # g(x)
    return (jnp.maximum(h + K * gate - K, 0.0)
            - jnp.maximum(-h + K * gate - K, 0.0))


if __name__ == "__main__":
    key = jax.random.PRNGKey(0)
    kx, kp = jax.random.split(key)
    x = jax.random.normal(kx, (B, IN), jnp.float32)
    params = make_params(kp)

    out = patchnn_forward(x, params)
    out = jax.block_until_ready(out)

    ref = reference_forward(x, params)
    assert out.shape == (B, OUT)
    assert jnp.allclose(out, ref, atol=1e-4, rtol=1e-4), (
        f"max abs err = {jnp.max(jnp.abs(out - ref))}")
    print("KERNEL_OK")
</pallas_src>

<mosaic_0001>
module attributes {stable_mosaic.version = 11 : i64} {
  func.func @patchnn_kernel(%arg0: memref<2x64xf32, #tpu.memory_space<vmem>>, %arg1: memref<72x42xf32, #tpu.memory_space<vmem>>, %arg2: memref<2xf32, #tpu.memory_space<smem>>, %arg3: memref<2x10xf32, #tpu.memory_space<vmem>>) attributes {dimension_semantics = [], scalar_prefetch = 0 : i64, scratch_operands = 0 : i64, tpu.core_type = #tpu.core_type<tc>} {
    %c0 = arith.constant 0 : index
    %0 = memref.load %arg2[%c0] : memref<2xf32, #tpu.memory_space<smem>>
    %c1 = arith.constant 1 : index
    %1 = memref.load %arg2[%c1] : memref<2xf32, #tpu.memory_space<smem>>
    %c0_0 = arith.constant 0 : index
    %c0_1 = arith.constant 0 : index
    %2 = vector.load %arg0[%c0_0, %c0_1] : memref<2x64xf32, #tpu.memory_space<vmem>>, vector<2x64xf32>
    %c0_2 = arith.constant 0 : index
    %c0_3 = arith.constant 0 : index
    %3 = vector.load %arg1[%c0_2, %c0_3] : memref<72x42xf32, #tpu.memory_space<vmem>>, vector<64x42xf32>
    %cst = arith.constant dense<0.000000e+00> : vector<2x42xf32>
    %4 = tpu.matmul %2, %3, %cst {dimension_numbers = #tpu.dot_dimension_numbers<[1], [0], [0], [1], [0, 0, 1, 1], [], []>} : vector<2x64xf32>, vector<64x42xf32>, vector<2x42xf32> -> vector<2x42xf32>
    %c64 = arith.constant 64 : index
    %c0_4 = arith.constant 0 : index
    %5 = vector.load %arg1[%c64, %c0_4] : memref<72x42xf32, #tpu.memory_space<vmem>>, vector<1x42xf32>
    %6 = vector.broadcast %5 : vector<1x42xf32> to vector<2x42xf32>
    %7 = arith.addf %4, %6 : vector<2x42xf32>
    %cst_5 = arith.constant 0.000000e+00 : f32
    %8 = vector.broadcast %cst_5 : f32 to vector<2x42xf32>
    %9 = arith.maximumf %7, %8 : vector<2x42xf32>
    %c65 = arith.constant 65 : index
    %c0_6 = arith.constant 0 : index
    %10 = vector.load %arg1[%c65, %c0_6] : memref<72x42xf32, #tpu.memory_space<vmem>>, vector<1x42xf32>
    %11 = vector.broadcast %10 : vector<1x42xf32> to vector<2x42xf32>
    %12 = arith.mulf %9, %11 : vector<2x42xf32>
    %cst_7 = arith.constant dense<0.000000e+00> : vector<2xf32>
    %13 = vector.multi_reduction <add>, %12, %cst_7 [1] : vector<2x42xf32> to vector<2xf32>
    %14 = vector.shape_cast %13 : vector<2xf32> to vector<2x1xf32>
    %15 = vector.broadcast %1 : f32 to vector<2x1xf32>
    %16 = arith.addf %14, %15 : vector<2x1xf32>
    %cst_8 = arith.constant 0.000000e+00 : f32
    %17 = vector.broadcast %cst_8 : f32 to vector<2x1xf32>
    %18 = arith.subf %17, %16 : vector<2x1xf32>
    %19 = math.exp %18 : vector<2x1xf32>
    %cst_9 = arith.constant 1.000000e+00 : f32
    %20 = vector.broadcast %cst_9 : f32 to vector<2x1xf32>
    %21 = arith.addf %20, %19 : vector<2x1xf32>
    %cst_10 = arith.constant 1.000000e+00 : f32
    %22 = vector.broadcast %cst_10 : f32 to vector<2x1xf32>
    %23 = arith.divf %22, %21 : vector<2x1xf32>
    %cst_11 = arith.constant 1.000000e+00 : f32
    %24 = vector.broadcast %cst_11 : f32 to vector<2x1xf32>
    %25 = arith.subf %23, %24 : vector<2x1xf32>
    %26 = vector.broadcast %0 : f32 to vector<2x1xf32>
    %27 = arith.mulf %26, %25 : vector<2x1xf32>
    %28 = vector.extract_strided_slice %7 {offsets = [0, 0], sizes = [2, 10], strides = [1, 1]} : vector<2x42xf32> to vector<2x10xf32>
    %29 = vector.broadcast %27 : vector<2x1xf32> to vector<2x10xf32>
    %30 = arith.addf %28, %29 : vector<2x10xf32>
    %cst_12 = arith.constant 0.000000e+00 : f32
    %31 = vector.broadcast %cst_12 : f32 to vector<2x10xf32>
    %32 = arith.maximumf %30, %31 : vector<2x10xf32>
    %33 = vector.broadcast %27 : vector<2x1xf32> to vector<2x10xf32>
    %34 = arith.subf %33, %28 : vector<2x10xf32>
    %cst_13 = arith.constant 0.000000e+00 : f32
    %35 = vector.broadcast %cst_13 : f32 to vector<2x10xf32>
    %36 = arith.maximumf %34, %35 : vector<2x10xf32>
    %37 = arith.subf %32, %36 : vector<2x10xf32>
    %c0_14 = arith.constant 0 : index
    %c0_15 = arith.constant 0 : index
    %38 = vector.load %arg3[%c0_14, %c0_15] : memref<2x10xf32, #tpu.memory_space<vmem>>, vector<2x10xf32>
    tpu.vector_store %arg3[%c0_14, %c0_15], %37 {strides = array<i32>} : memref<2x10xf32, #tpu.memory_space<vmem>>, vector<2x10xf32>,
    return
  }
}

</mosaic_0001>

<bundles_post_ra>
// kernel: tpu_custom_call.1
= control target key start
LH: loop header
LB: loop body
LE: loop exit
PB: predicated region body
PF: predicated region fallthrough
CT: control target
= control target key end

     0   :  { %8 = vsyncpa [#allocation4], 0  ;;  %s233_s0 = inlined_call_operand.vmem [shape: f32[2,64], index: 0, kind: input, shape index: {}]   ;;  %s234_s1 = inlined_call_operand.vmem [shape: f32[72,42], index: 1, kind: input, shape index: {}]   ;;  %s235_s2 = inlined_call_operand.vmem [shape: f32[2], index: 2, kind: input, shape index: {}]   ;;  %s236_s3 = inlined_call_operand.hbm [shape: f32[2,10], index: 3, kind: output, shape index: {}]  }
   0x1   :  { %9 = vsyncpa [#allocation3], 0  ;;  %s19_s14 = sshll.u32 %s235_s2, 4  ;;  %s172_s15 = smov [#allocation2]   ;;  %s20_s14 = int_to_ptr.vmem [resolvable:$true] %s19_s14 }
   0x2   :  { %22 = dma.vmem_to_smem %s20_s14, 16, %s172_s15, [#allocation4]  }
   0x3   :  { %168 = dma.done.wait [#allocation4], 16  }
   0x4   :  { %169 = vsyncadd [#allocation4], 4294967280 }
   0x5   :  { %27 = sfence }
   0x6   :  { %v38_v0 = vld [vmem:[%s234_s1 + $0x38] sm:$0xff]  ;;  %v37_v1 = vld [vmem:[%s234_s1 + $0x30] sm:$0xff]  ;;  %v36_v2 = vld [vmem:[%s234_s1 + $0x28] sm:$0xff]  ;;  %vm41_vm0 = vcmask 523264   ;;  %vm69_vm1 = vcmask 336896   ;;  %s121_s10 = sld [smem:[#allocation2 + $0x1]] }
   0x7   :  { %53 = vmatpush.msra.mxu0 %v38_v0  ;;  %v35_v3 = vld [vmem:[%s234_s1 + $0x20] sm:$0xff]  ;;  %v34_v4 = vld [vmem:[%s234_s1 + $0x18] sm:$0xff]  ;;  %v33_v5 = vld [vmem:[%s234_s1 + $0x10] sm:$0xff]  ;;  %s111_s14 = sshll.u32 %s236_s3, 4  ;;  %vm102_vm6 = vcmask 74752   ;;  %s112_s14 = int_to_ptr.hbm [resolvable:$true] %s111_s14 }
   0x8   :  { %v32_v6 = vld [vmem:[%s234_s1 + $0x8] sm:$0xff]  ;;  %v31_v7 = vld [vmem:[%s234_s1] sm:$0xff] }
   0x9   :  { %54 = vmatpush.msra.mxu0 %v37_v1  ;;  %v30_v8 = vld [vmem:[%s233_s0] sm:$0x3]  ;;  %s28_s0 = sld [smem:[#allocation2]] }
   0xa   :  { %v126_v9 = vld [vmem:[%s234_s1 + $0x40] ss:$0 sm:$0xff]  ;;  %v127_v12 = vld [vmem:[%s234_s1 + $0x41] ss:$0 sm:$0xff]  ;;  %s173_s1 = smov [#allocation5]  }
   0xb   :  { %55 = vmatpush.msra.mxu0 %v36_v2  ;;  %s109_s11 = sshll.u32 %s173_s1, 4  ;;  %s110_s11 = int_to_ptr.vmem [resolvable:$true] %s109_s11 }
   0xc   :  { %v73_v16 = vstv %s121_s10 }
   0xd   :  { %56 = vmatpush.msra.mxu0 %v35_v3 }
   0xf   :  { %57 = vmatpush.msra.mxu0 %v34_v4  ;;  %v95_v33 = vstv %s28_s0 }
  0x11   :  { %58 = vmatpush.msra.mxu0 %v33_v5 }
  0x13   :  { %59 = vmatpush.msra.mxu0 %v32_v6 }
  0x15   :  { %60 = vmatpush.msra.mxu0 %v31_v7 }
  0x16   :  { %122 = vmatmul.msk.f32.vlgmr.msra.gmra.mxu0 %vm41_vm0, %v30_v8 }
  0x93   :  { %v62_v10 = vpop.f32.mrf.mxu0 }
  0x94   :  { %v63_v11 = vadd.f32 %v126_v9, %v62_v10 }
  0x96   :  { %v65_v13 = vmax.f32 %v63_v11, 0.0 }
  0x98   :  { %v68_v14 = vmul.f32 %v127_v12, %v65_v13 }
  0x9a   :  { %v70_v15 = vsel %vm69_vm1, %v68_v14, 0.0 }
  0x9b   :  { %71 = vadd.xlane.f32.xlu0 %v70_v15 }
 0x10e   :  { %v72_v17 = vpop.xlane.xlu0 %71 }
 0x10f   :  { %v74_v18 = vadd.f32 %v73_v16, %v72_v17 }
 0x111   :  { %v75_v19 = vsub.f32 0.0, %v74_v18 }
 0x113   :  { %v76_v20 = vmul.f32 1.442695, %v75_v19 }
 0x115   :  { %128 = vpow2.f32 %v76_v20 }
 0x11b   :  { %v129_v21 = vpop.eup %128 }
 0x11c   :  { %v78_v22 = vadd.f32 1.0, %v129_v21 }
 0x11e   :  { %130 = vrcp.f32 %v78_v22  ;;  %v90_v26 = vand.u32 2147483648, %v78_v22  ;;  %v88_v28 = vand.u32 2147483647, %v78_v22  ;;  %vm84_vm3 = vweird.f32 %v78_v22 }
 0x120   :  { %v91_v30 = vor.u32 1.1754944e-38, %v90_v26  ;;  %vm89_vm5 = vcmp.eq.f32.partialorder %v88_v28, 8.507059e+37 }
 0x124   :  { %v131_v23 = vpop.eup %130 }
 0x125   :  { %v80_v24 = vmul.f32 %v131_v23, %v78_v22  ;;  %vm85_vm2 = vweird.f32 %v131_v23 }
 0x126   :  { %vm86_vm4 = vmor %vm84_vm3, %vm85_vm2 }
 0x127   :  { %v81_v25 = vsub.f32 1.0, %v80_v24 }
 0x129   :  { %v82_v27 = vmul.f32 %v131_v23, %v81_v25 }
 0x12b   :  { %v83_v29 = vadd.f32 %v131_v23, %v82_v27 }
 0x12d   :  { %v87_v31 = vsel %vm86_vm4, %v131_v23, %v83_v29 }
 0x12e   :  { %v92_v32 = vsel %vm89_vm5, %v91_v30, %v87_v31 }
 0x12f   :  { %v123_v34 = vadd.f32 -1.0, %v92_v32 }
 0x131   :  { %v96_v35 = vmul.f32 %v123_v34, %v95_v33 }
 0x133   :  { %v97_v36 = vadd.f32 %v96_v35, %v63_v11  ;;  %v99_v37 = vsub.f32 %v96_v35, %v63_v11 }
 0x135   :  { %v98_v38 = vmax.f32 %v97_v36, 0.0  ;;  %v100_v39 = vmax.f32 %v99_v37, 0.0 }
 0x137   :  { %v101_v40 = vsub.f32 %v98_v38, %v100_v39 }
 0x139   :  { %103 = vst.msk [vmem:[#allocation5] sm:$0x3] %vm102_vm6, %v101_v40 }
 0x13a   :  { %114 = dma.vmem_to_hbm [thread:$0]  %s110_s11, 32, %s112_s14, [#allocation3]  }
 0x13b   :  { %170 = dma.done.wait [#allocation3], 32  }
 0x13c   :  { %171 = vsyncadd [#allocation3], 4294967264 }
 0x13d   :  { %119 = vsyncpa [#allocation3], 1 }
 0x13e   :  { %120 = vsyncpa [#allocation4], 1 }

</bundles_post_ra>
